<compile_context>
chip_gen: v6e
topology: v6e:2x2x1
jax: 0.10.0
libtpu: 0.0.40
codegen_flags: <defaults>
</compile_context>

<pallas_src>
import functools
import math

import jax
import jax.numpy as jnp
from jax import lax
from jax.experimental import pallas as pl
from jax.experimental.pallas import tpu as pltpu

# Config constants from ScalableLossConfig (deterministic, in-script).
TARGET_SHARPE = 4.0
POS_CONC_LIMIT = 0.01
MAX_DD_TARGET = 0.05

_LANES = 128
_MAX_ASSET_TILE = 8192      # 64 statically-unrolled 128-lane chunks max


def _vmem_budgets():
    """Generation-aware VMEM sizing (v5e/v6e: 128 MiB, v7x: 64 MiB per TC)."""
    try:
        cap = int(pltpu.get_tpu_info().vmem_capacity_bytes)
    except Exception:
        cap = 64 << 20                      # conservative default: v7x per-TC
    tile_budget = int(cap * 0.40)           # for 3 inputs x 2 pipeline buffers
    vmem_limit = int(cap * 0.80)            # scoped-VMEM limit handed to Mosaic
    return tile_budget, vmem_limit


def _choose_batch_tile(batch):
    if batch <= 256 or batch % 8 != 0:
        return batch                        # block == full batch dim (always legal)
    for cand in range(256, 7, -8):          # largest multiple-of-8 divisor <= 256
        if batch % cand == 0:
            return cand
    return batch


def _choose_asset_tile(b_tile, num_assets, tile_budget, max_tile=None):
    # Only the double-buffered input tiles scale with the asset tile now; the
    # accumulators are a fixed 5 * b_tile * 128 floats.
    bytes_per_lane = 3 * 2 * b_tile * 4
    cap = (tile_budget // bytes_per_lane) // _LANES * _LANES
    cap = max(_LANES, min(cap, _MAX_ASSET_TILE))
    if max_tile is not None:
        cap = max(_LANES, min(cap, (max_tile // _LANES) * _LANES))
    if num_assets <= cap:
        return num_assets                   # single step; block == full asset axis
    return cap


def _row_stats_kernel(pos_ref, ret_ref, conf_ref,            # inputs  (Bt, TA)
                      pr_ref, p2_ref, cvar_ref,               # outputs (Bt, 1)
                      acc_abs, acc_pcr, acc_p2, acc_c, acc_c2,  # VMEM (Bt, 128)
                      *, num_assets, a_tile, need_mask):
    k = pl.program_id(1)
    b_tile = pos_ref.shape[0]
    n_full = a_tile // _LANES
    rem = a_tile % _LANES     # > 0 only when the whole asset axis fits one tile

    if need_mask:
        lane = lax.broadcasted_iota(jnp.int32, (b_tile, _LANES), 1)
        limit = num_assets - k * a_tile     # scalar; valid lanes per chunk

    def stats(p, r, c):
        pc = p * c
        return (jnp.abs(pc), pc * r, p * p, c, c * c)

    # Lane-wise fold into five narrow register-resident carries (no VMEM RMW).
    zeros = jnp.zeros((b_tile, _LANES), jnp.float32)
    carry = (zeros, zeros, zeros, zeros, zeros)
    for j in range(n_full):                 # static 128-lane chunks
        start = j * _LANES
        sl = pl.ds(start, _LANES)
        p = pos_ref[:, sl]
        r = ret_ref[:, sl]
        c = conf_ref[:, sl]
        if need_mask:
            valid = lane < (limit - start)  # zero out-of-range / stale lanes
            p = jnp.where(valid, p, 0.0)
            r = jnp.where(valid, r, 0.0)
            c = jnp.where(valid, c, 0.0)
        carry = tuple(a + v for a, v in zip(carry, stats(p, r, c)))
    t_abs, t_pcr, t_p2, t_c, t_c2 = carry

    # < 128-lane tail (only in the single-step, A not a lane-multiple case):
    # reduce straight to per-row scalars.
    if rem:
        sl = pl.ds(n_full * _LANES, rem)
        tails = tuple(jnp.sum(v, axis=1, keepdims=True)
                      for v in stats(pos_ref[:, sl], ret_ref[:, sl],
                                     conf_ref[:, sl]))
    else:
        tails = (0.0, 0.0, 0.0, 0.0, 0.0)

    accs = (acc_abs, acc_pcr, acc_p2, acc_c, acc_c2)
    carries = (t_abs, t_pcr, t_p2, t_c, t_c2)

    @pl.when(k == 0)
    def _init():                            # init folded into the first step
        for a, t in zip(accs, carries):
            a[...] = t

    @pl.when(k > 0)
    def _accum():
        for a, t in zip(accs, carries):
            a[...] += t

    @pl.when(k == pl.num_programs(1) - 1)
    def _finalize():
        n = float(num_assets)
        sums = [jnp.sum(a[...], axis=1, keepdims=True) + t
                for a, t in zip(accs, tails)]
        s_abs, s_pcr, s_p2, s_c, s_c2 = sums
        # portfolio return per row: sum(p*c*r) / (sum|p*c| + 1e-8)
        pr_ref[...] = s_pcr / (s_abs + 1e-8)
        p2_ref[...] = s_p2
        # torch.var(dim=1, unbiased) via one-pass formula; can cancel for
        # tightly-clustered confidence with very large num_assets.
        cvar_ref[...] = (s_c2 - s_c * s_c * (1.0 / n)) / (n - 1.0)


@functools.partial(jax.jit, static_argnames=("b_tile", "a_tile", "vmem_limit"))
def _forward(positions, returns, confidence, *, b_tile, a_tile, vmem_limit):
    B, A = positions.shape
    num_b = B // b_tile
    num_k = -(-A // a_tile)
    need_mask = (A % a_tile) != 0

    kernel = functools.partial(_row_stats_kernel, num_assets=A, a_tile=a_tile,
                               need_mask=need_mask)
    in_spec = pl.BlockSpec((b_tile, a_tile), lambda b, k: (b, k))
    out_spec = pl.BlockSpec((b_tile, 1), lambda b, k: (b, 0))

    pr, p2, cvar = pl.pallas_call(
        kernel,
        out_shape=(jax.ShapeDtypeStruct((B, 1), jnp.float32),) * 3,
        grid_spec=pltpu.PrefetchScalarGridSpec(
            num_scalar_prefetch=0,
            grid=(num_b, num_k),
            in_specs=[in_spec, in_spec, in_spec],
            out_specs=[out_spec, out_spec, out_spec],
            scratch_shapes=[pltpu.VMEM((b_tile, _LANES), jnp.float32)] * 5,
        ),
        compiler_params=pltpu.CompilerParams(
            dimension_semantics=("parallel", "arbitrary"),
            vmem_limit_bytes=vmem_limit),
        cost_estimate=pl.CostEstimate(
            flops=11 * B * A,
            transcendentals=0,
            bytes_accessed=3 * B * A * 4 + 3 * B * 4),
    )(positions, returns, confidence)

    pr = pr[:, 0]
    p2 = p2[:, 0]
    cvar = cvar[:, 0]

    # O(B) batch-level epilogue (Sharpe / penalties / drawdown) in plain JAX.
    mean_r = jnp.mean(pr)
    std_r = jnp.std(pr, ddof=1) + 1e-8      # torch.std default is unbiased
    sharpe = mean_r * 252.0 / (std_r * math.sqrt(252.0))
    sharpe_ratios = jnp.broadcast_to(sharpe, (B,))
    gap = jnp.maximum(TARGET_SHARPE - sharpe, 0.0)
    sharpe_loss = gap * gap                 # mean of B identical gaps

    conc = jnp.mean(p2)
    conc_pen = jnp.maximum(conc - POS_CONC_LIMIT, 0.0) * 10.0
    conf_pen = jnp.mean(cvar) * 0.1

    cum = jnp.cumsum(pr)
    run_max_last = jnp.max(cum)             # == torch.cummax(cum)[0][-1]
    dd = (run_max_last - cum[-1]) / (run_max_last + 1e-8)
    dd_pen = jnp.maximum(dd - MAX_DD_TARGET, 0.0) * 20.0

    total_pen = conc_pen + conf_pen + dd_pen
    return {
        'total_loss': sharpe_loss + total_pen,
        'sharpe_loss': sharpe_loss,
        'mean_sharpe_ratio': sharpe,
        'sharpe_ratios': sharpe_ratios,
        'portfolio_returns': pr,
        'concentration_penalty': conc_pen,
        'confidence_penalty': conf_pen,
        'drawdown_penalty': dd_pen,
        'total_penalty': total_pen,
    }


def scalable_sharpe_loss(positions, returns, confidence, max_tile=None):
    B, A = positions.shape
    tile_budget, vmem_limit = _vmem_budgets()
    b_tile = _choose_batch_tile(B)
    a_tile = _choose_asset_tile(b_tile, A, tile_budget, max_tile)
    return _forward(positions.astype(jnp.float32),
                    returns.astype(jnp.float32),
                    confidence.astype(jnp.float32),
                    b_tile=b_tile, a_tile=a_tile, vmem_limit=vmem_limit)


def reference(positions, returns, confidence):
    """Pure-JAX reference matching the PyTorch forward (empty return_history)."""
    B = positions.shape[0]
    wp = positions * confidence
    ps = jnp.sum(jnp.abs(wp), axis=1, keepdims=True)
    normed = wp / (ps + 1e-8)
    pr = jnp.sum(normed * returns, axis=1)

    mean_r = jnp.mean(pr)
    std_r = jnp.std(pr, ddof=1) + 1e-8
    sharpe = mean_r * 252.0 / (std_r * math.sqrt(252.0))
    sharpe_ratios = jnp.broadcast_to(sharpe, (B,))
    gaps = jnp.maximum(TARGET_SHARPE - sharpe_ratios, 0.0)
    sharpe_loss = jnp.mean(gaps ** 2)

    conc = jnp.mean(jnp.sum(positions ** 2, axis=1))
    conc_pen = jnp.maximum(conc - POS_CONC_LIMIT, 0.0) * 10.0
    conf_var = jnp.mean(jnp.var(confidence, axis=1, ddof=1))
    conf_pen = conf_var * 0.1

    cum = jnp.cumsum(pr)
    run_max = lax.cummax(cum, axis=0)
    dd = (run_max[-1] - cum[-1]) / (run_max[-1] + 1e-8)
    dd_pen = jnp.maximum(dd - MAX_DD_TARGET, 0.0) * 20.0

    total_pen = conc_pen + conf_pen + dd_pen
    return {
        'total_loss': sharpe_loss + total_pen,
        'sharpe_loss': sharpe_loss,
        'mean_sharpe_ratio': jnp.mean(sharpe_ratios),
        'sharpe_ratios': sharpe_ratios,
        'portfolio_returns': pr,
        'concentration_penalty': conc_pen,
        'confidence_penalty': conf_pen,
        'drawdown_penalty': dd_pen,
        'total_penalty': total_pen,
    }


if __name__ == "__main__":
    key = jax.random.PRNGKey(0)
    k1, k2, k3 = jax.random.split(key, 3)

    def make(B, A):
        positions = jax.random.normal(k1, (B, A), jnp.float32) * 0.02
        returns = jax.random.normal(k2, (B, A), jnp.float32) * 0.01
        confidence = jax.random.uniform(k3, (B, A), dtype=jnp.float32)
        return positions, returns, confidence

    def check(B, A, max_tile=None):
        p, r, c = make(B, A)
        out = scalable_sharpe_loss(p, r, c, max_tile=max_tile)
        out = jax.tree_util.tree_map(jax.block_until_ready, out)
        ref = reference(p, r, c)
        for name in ref:
            assert jnp.allclose(out[name], ref[name], rtol=2e-3, atol=1e-5), (
                name, out[name], ref[name])

    check(8, 256)                   # demo shape: single grid step
    check(16, 768, max_tile=256)    # multi asset-tile reduction path
    check(8, 840, max_tile=256)     # partial last tile + in-kernel lane mask
    check(8, 840)                   # single tile with <128-lane tail (no pad)
    print("KERNEL_OK")
</pallas_src>

<mosaic_0001>
module attributes {stable_mosaic.version = 11 : i64} {
  func.func @_row_stats_kernel(%arg0: i32, %arg1: i32, %arg2: memref<8x256xf32, #tpu.memory_space<vmem>>, %arg3: memref<8x256xf32, #tpu.memory_space<vmem>>, %arg4: memref<8x256xf32, #tpu.memory_space<vmem>>, %arg5: memref<8x1xf32, #tpu.memory_space<vmem>>, %arg6: memref<8x1xf32, #tpu.memory_space<vmem>>, %arg7: memref<8x1xf32, #tpu.memory_space<vmem>>, %arg8: memref<8x128xf32, #tpu.memory_space<vmem>>, %arg9: memref<8x128xf32, #tpu.memory_space<vmem>>, %arg10: memref<8x128xf32, #tpu.memory_space<vmem>>, %arg11: memref<8x128xf32, #tpu.memory_space<vmem>>, %arg12: memref<8x128xf32, #tpu.memory_space<vmem>>) attributes {dimension_semantics = [#tpu.dimension_semantics<parallel>, #tpu.dimension_semantics<arbitrary>], iteration_bounds = array<i64: 1, 1>, scalar_prefetch = 0 : i64, scratch_operands = 5 : i64, tpu.core_type = #tpu.core_type<tc>, window_params = [{transform_indices = @transform_0, window_bounds = array<i64: 8, 256>}, {transform_indices = @transform_1, window_bounds = array<i64: 8, 256>}, {transform_indices = @transform_2, window_bounds = array<i64: 8, 256>}, {transform_indices = @transform_3, window_bounds = array<i64: 8, 1>}, {transform_indices = @transform_4, window_bounds = array<i64: 8, 1>}, {transform_indices = @transform_5, window_bounds = array<i64: 8, 1>}]} {
    %cst = arith.constant 0.000000e+00 : f32
    %0 = vector.broadcast %cst : f32 to vector<8x128xf32>
    %c0 = arith.constant 0 : index
    %c0_0 = arith.constant 0 : index
    %1 = vector.load %arg2[%c0, %c0_0] : memref<8x256xf32, #tpu.memory_space<vmem>>, vector<8x128xf32>
    %c0_1 = arith.constant 0 : index
    %c0_2 = arith.constant 0 : index
    %2 = vector.load %arg3[%c0_1, %c0_2] : memref<8x256xf32, #tpu.memory_space<vmem>>, vector<8x128xf32>
    %c0_3 = arith.constant 0 : index
    %c0_4 = arith.constant 0 : index
    %3 = vector.load %arg4[%c0_3, %c0_4] : memref<8x256xf32, #tpu.memory_space<vmem>>, vector<8x128xf32>
    %4 = arith.mulf %1, %3 : vector<8x128xf32>
    %5 = math.absf %4 : vector<8x128xf32>
    %6 = arith.mulf %4, %2 : vector<8x128xf32>
    %7 = arith.mulf %1, %1 : vector<8x128xf32>
    %8 = arith.mulf %3, %3 : vector<8x128xf32>
    %9 = arith.addf %0, %5 : vector<8x128xf32>
    %10 = arith.addf %0, %6 : vector<8x128xf32>
    %11 = arith.addf %0, %7 : vector<8x128xf32>
    %12 = arith.addf %0, %3 : vector<8x128xf32>
    %13 = arith.addf %0, %8 : vector<8x128xf32>
    %c0_5 = arith.constant 0 : index
    %c128 = arith.constant 128 : index
    %14 = vector.load %arg2[%c0_5, %c128] : memref<8x256xf32, #tpu.memory_space<vmem>>, vector<8x128xf32>
    %c0_6 = arith.constant 0 : index
    %c128_7 = arith.constant 128 : index
    %15 = vector.load %arg3[%c0_6, %c128_7] : memref<8x256xf32, #tpu.memory_space<vmem>>, vector<8x128xf32>
    %c0_8 = arith.constant 0 : index
    %c128_9 = arith.constant 128 : index
    %16 = vector.load %arg4[%c0_8, %c128_9] : memref<8x256xf32, #tpu.memory_space<vmem>>, vector<8x128xf32>
    %17 = arith.mulf %14, %16 : vector<8x128xf32>
    %18 = math.absf %17 : vector<8x128xf32>
    %19 = arith.mulf %17, %15 : vector<8x128xf32>
    %20 = arith.mulf %14, %14 : vector<8x128xf32>
    %21 = arith.mulf %16, %16 : vector<8x128xf32>
    %22 = arith.addf %9, %18 : vector<8x128xf32>
    %23 = arith.addf %10, %19 : vector<8x128xf32>
    %24 = arith.addf %11, %20 : vector<8x128xf32>
    %25 = arith.addf %12, %16 : vector<8x128xf32>
    %26 = arith.addf %13, %21 : vector<8x128xf32>
    %c0_i32 = arith.constant 0 : i32
    %27 = arith.cmpi eq, %arg1, %c0_i32 : i32
    %28 = arith.extui %27 : i1 to i32
    %c0_i32_10 = arith.constant 0 : i32
    %29 = arith.cmpi ne, %28, %c0_i32_10 : i32
    scf.if %29 {
      %c0_15 = arith.constant 0 : index
      %c0_16 = arith.constant 0 : index
      %36 = vector.load %arg8[%c0_15, %c0_16] : memref<8x128xf32, #tpu.memory_space<vmem>>, vector<8x128xf32>
      tpu.vector_store %arg8[%c0_15, %c0_16], %22 {strides = array<i32>} : memref<8x128xf32, #tpu.memory_space<vmem>>, vector<8x128xf32>,
      %c0_17 = arith.constant 0 : index
      %c0_18 = arith.constant 0 : index
      %37 = vector.load %arg9[%c0_17, %c0_18] : memref<8x128xf32, #tpu.memory_space<vmem>>, vector<8x128xf32>
      tpu.vector_store %arg9[%c0_17, %c0_18], %23 {strides = array<i32>} : memref<8x128xf32, #tpu.memory_space<vmem>>, vector<8x128xf32>,
      %c0_19 = arith.constant 0 : index
      %c0_20 = arith.constant 0 : index
      %38 = vector.load %arg10[%c0_19, %c0_20] : memref<8x128xf32, #tpu.memory_space<vmem>>, vector<8x128xf32>
      tpu.vector_store %arg10[%c0_19, %c0_20], %24 {strides = array<i32>} : memref<8x128xf32, #tpu.memory_space<vmem>>, vector<8x128xf32>,
      %c0_21 = arith.constant 0 : index
      %c0_22 = arith.constant 0 : index
      %39 = vector.load %arg11[%c0_21, %c0_22] : memref<8x128xf32, #tpu.memory_space<vmem>>, vector<8x128xf32>
      tpu.vector_store %arg11[%c0_21, %c0_22], %25 {strides = array<i32>} : memref<8x128xf32, #tpu.memory_space<vmem>>, vector<8x128xf32>,
      %c0_23 = arith.constant 0 : index
      %c0_24 = arith.constant 0 : index
      %40 = vector.load %arg12[%c0_23, %c0_24] : memref<8x128xf32, #tpu.memory_space<vmem>>, vector<8x128xf32>
      tpu.vector_store %arg12[%c0_23, %c0_24], %26 {strides = array<i32>} : memref<8x128xf32, #tpu.memory_space<vmem>>, vector<8x128xf32>,
    } else {
    }
    %c0_i32_11 = arith.constant 0 : i32
    %30 = arith.cmpi sgt, %arg1, %c0_i32_11 : i32
    %31 = arith.extui %30 : i1 to i32
    %c0_i32_12 = arith.constant 0 : i32
    %32 = arith.cmpi ne, %31, %c0_i32_12 : i32
    scf.if %32 {
      %c0_15 = arith.constant 0 : index
      %c0_16 = arith.constant 0 : index
      %36 = vector.load %arg8[%c0_15, %c0_16] : memref<8x128xf32, #tpu.memory_space<vmem>>, vector<8x128xf32>
      %37 = arith.addf %36, %22 : vector<8x128xf32>
      %c0_17 = arith.constant 0 : index
      %c0_18 = arith.constant 0 : index
      %38 = vector.load %arg8[%c0_17, %c0_18] : memref<8x128xf32, #tpu.memory_space<vmem>>, vector<8x128xf32>
      tpu.vector_store %arg8[%c0_17, %c0_18], %37 {strides = array<i32>} : memref<8x128xf32, #tpu.memory_space<vmem>>, vector<8x128xf32>,
      %c0_19 = arith.constant 0 : index
      %c0_20 = arith.constant 0 : index
      %39 = vector.load %arg9[%c0_19, %c0_20] : memref<8x128xf32, #tpu.memory_space<vmem>>, vector<8x128xf32>
      %40 = arith.addf %39, %23 : vector<8x128xf32>
      %c0_21 = arith.constant 0 : index
      %c0_22 = arith.constant 0 : index
      %41 = vector.load %arg9[%c0_21, %c0_22] : memref<8x128xf32, #tpu.memory_space<vmem>>, vector<8x128xf32>
      tpu.vector_store %arg9[%c0_21, %c0_22], %40 {strides = array<i32>} : memref<8x128xf32, #tpu.memory_space<vmem>>, vector<8x128xf32>,
      %c0_23 = arith.constant 0 : index
      %c0_24 = arith.constant 0 : index
      %42 = vector.load %arg10[%c0_23, %c0_24] : memref<8x128xf32, #tpu.memory_space<vmem>>, vector<8x128xf32>
      %43 = arith.addf %42, %24 : vector<8x128xf32>
      %c0_25 = arith.constant 0 : index
      %c0_26 = arith.constant 0 : index
      %44 = vector.load %arg10[%c0_25, %c0_26] : memref<8x128xf32, #tpu.memory_space<vmem>>, vector<8x128xf32>
      tpu.vector_store %arg10[%c0_25, %c0_26], %43 {strides = array<i32>} : memref<8x128xf32, #tpu.memory_space<vmem>>, vector<8x128xf32>,
      %c0_27 = arith.constant 0 : index
      %c0_28 = arith.constant 0 : index
      %45 = vector.load %arg11[%c0_27, %c0_28] : memref<8x128xf32, #tpu.memory_space<vmem>>, vector<8x128xf32>
      %46 = arith.addf %45, %25 : vector<8x128xf32>
      %c0_29 = arith.constant 0 : index
      %c0_30 = arith.constant 0 : index
      %47 = vector.load %arg11[%c0_29, %c0_30] : memref<8x128xf32, #tpu.memory_space<vmem>>, vector<8x128xf32>
      tpu.vector_store %arg11[%c0_29, %c0_30], %46 {strides = array<i32>} : memref<8x128xf32, #tpu.memory_space<vmem>>, vector<8x128xf32>,
      %c0_31 = arith.constant 0 : index
      %c0_32 = arith.constant 0 : index
      %48 = vector.load %arg12[%c0_31, %c0_32] : memref<8x128xf32, #tpu.memory_space<vmem>>, vector<8x128xf32>
      %49 = arith.addf %48, %26 : vector<8x128xf32>
      %c0_33 = arith.constant 0 : index
      %c0_34 = arith.constant 0 : index
      %50 = vector.load %arg12[%c0_33, %c0_34] : memref<8x128xf32, #tpu.memory_space<vmem>>, vector<8x128xf32>
      tpu.vector_store %arg12[%c0_33, %c0_34], %49 {strides = array<i32>} : memref<8x128xf32, #tpu.memory_space<vmem>>, vector<8x128xf32>,
    } else {
    }
    %c0_i32_13 = arith.constant 0 : i32
    %33 = arith.cmpi eq, %arg1, %c0_i32_13 : i32
    %34 = arith.extui %33 : i1 to i32
    %c0_i32_14 = arith.constant 0 : i32
    %35 = arith.cmpi ne, %34, %c0_i32_14 : i32
    scf.if %35 {
      %c0_15 = arith.constant 0 : index
      %c0_16 = arith.constant 0 : index
      %36 = vector.load %arg8[%c0_15, %c0_16] : memref<8x128xf32, #tpu.memory_space<vmem>>, vector<8x128xf32>
      %cst_17 = arith.constant dense<0.000000e+00> : vector<8xf32>
      %37 = vector.multi_reduction <add>, %36, %cst_17 [1] : vector<8x128xf32> to vector<8xf32>
      %38 = vector.shape_cast %37 : vector<8xf32> to vector<8x1xf32>
      %cst_18 = arith.constant 0.000000e+00 : f32
      %39 = vector.broadcast %cst_18 : f32 to vector<8x1xf32>
      %40 = arith.addf %38, %39 : vector<8x1xf32>
      %c0_19 = arith.constant 0 : index
      %c0_20 = arith.constant 0 : index
      %41 = vector.load %arg9[%c0_19, %c0_20] : memref<8x128xf32, #tpu.memory_space<vmem>>, vector<8x128xf32>
      %cst_21 = arith.constant dense<0.000000e+00> : vector<8xf32>
      %42 = vector.multi_reduction <add>, %41, %cst_21 [1] : vector<8x128xf32> to vector<8xf32>
      %43 = vector.shape_cast %42 : vector<8xf32> to vector<8x1xf32>
      %cst_22 = arith.constant 0.000000e+00 : f32
      %44 = vector.broadcast %cst_22 : f32 to vector<8x1xf32>
      %45 = arith.addf %43, %44 : vector<8x1xf32>
      %c0_23 = arith.constant 0 : index
      %c0_24 = arith.constant 0 : index
      %46 = vector.load %arg10[%c0_23, %c0_24] : memref<8x128xf32, #tpu.memory_space<vmem>>, vector<8x128xf32>
      %cst_25 = arith.constant dense<0.000000e+00> : vector<8xf32>
      %47 = vector.multi_reduction <add>, %46, %cst_25 [1] : vector<8x128xf32> to vector<8xf32>
      %48 = vector.shape_cast %47 : vector<8xf32> to vector<8x1xf32>
      %cst_26 = arith.constant 0.000000e+00 : f32
      %49 = vector.broadcast %cst_26 : f32 to vector<8x1xf32>
      %50 = arith.addf %48, %49 : vector<8x1xf32>
      %c0_27 = arith.constant 0 : index
      %c0_28 = arith.constant 0 : index
      %51 = vector.load %arg11[%c0_27, %c0_28] : memref<8x128xf32, #tpu.memory_space<vmem>>, vector<8x128xf32>
      %cst_29 = arith.constant dense<0.000000e+00> : vector<8xf32>
      %52 = vector.multi_reduction <add>, %51, %cst_29 [1] : vector<8x128xf32> to vector<8xf32>
      %53 = vector.shape_cast %52 : vector<8xf32> to vector<8x1xf32>
      %cst_30 = arith.constant 0.000000e+00 : f32
      %54 = vector.broadcast %cst_30 : f32 to vector<8x1xf32>
      %55 = arith.addf %53, %54 : vector<8x1xf32>
      %c0_31 = arith.constant 0 : index
      %c0_32 = arith.constant 0 : index
      %56 = vector.load %arg12[%c0_31, %c0_32] : memref<8x128xf32, #tpu.memory_space<vmem>>, vector<8x128xf32>
      %cst_33 = arith.constant dense<0.000000e+00> : vector<8xf32>
      %57 = vector.multi_reduction <add>, %56, %cst_33 [1] : vector<8x128xf32> to vector<8xf32>
      %58 = vector.shape_cast %57 : vector<8xf32> to vector<8x1xf32>
      %cst_34 = arith.constant 0.000000e+00 : f32
      %59 = vector.broadcast %cst_34 : f32 to vector<8x1xf32>
      %60 = arith.addf %58, %59 : vector<8x1xf32>
      %cst_35 = arith.constant 9.99999993E-9 : f32
      %61 = vector.broadcast %cst_35 : f32 to vector<8x1xf32>
      %62 = arith.addf %40, %61 : vector<8x1xf32>
      %63 = arith.divf %45, %62 : vector<8x1xf32>
      %c0_36 = arith.constant 0 : index
      %c0_37 = arith.constant 0 : index
      %64 = vector.load %arg5[%c0_36, %c0_37] : memref<8x1xf32, #tpu.memory_space<vmem>>, vector<8x1xf32>
      tpu.vector_store %arg5[%c0_36, %c0_37], %63 {strides = array<i32>} : memref<8x1xf32, #tpu.memory_space<vmem>>, vector<8x1xf32>,
      %c0_38 = arith.constant 0 : index
      %c0_39 = arith.constant 0 : index
      %65 = vector.load %arg6[%c0_38, %c0_39] : memref<8x1xf32, #tpu.memory_space<vmem>>, vector<8x1xf32>
      tpu.vector_store %arg6[%c0_38, %c0_39], %50 {strides = array<i32>} : memref<8x1xf32, #tpu.memory_space<vmem>>, vector<8x1xf32>,
      %66 = arith.mulf %55, %55 : vector<8x1xf32>
      %cst_40 = arith.constant 3.906250e-03 : f32
      %67 = vector.broadcast %cst_40 : f32 to vector<8x1xf32>
      %68 = arith.mulf %66, %67 : vector<8x1xf32>
      %69 = arith.subf %60, %68 : vector<8x1xf32>
      %cst_41 = arith.constant 2.550000e+02 : f32
      %70 = vector.broadcast %cst_41 : f32 to vector<8x1xf32>
      %71 = arith.divf %69, %70 : vector<8x1xf32>
      %c0_42 = arith.constant 0 : index
      %c0_43 = arith.constant 0 : index
      %72 = vector.load %arg7[%c0_42, %c0_43] : memref<8x1xf32, #tpu.memory_space<vmem>>, vector<8x1xf32>
      tpu.vector_store %arg7[%c0_42, %c0_43], %71 {strides = array<i32>} : memref<8x1xf32, #tpu.memory_space<vmem>>, vector<8x1xf32>,
    } else {
    }
    return
  }
  func.func @transform_0(%arg0: i32, %arg1: i32) -> (i32, i32) {
    %c0_i32 = arith.constant 0 : i32
    return %arg0, %arg1 : i32, i32
  }
  func.func @transform_1(%arg0: i32, %arg1: i32) -> (i32, i32) {
    %c0_i32 = arith.constant 0 : i32
    return %arg0, %arg1 : i32, i32
  }
  func.func @transform_2(%arg0: i32, %arg1: i32) -> (i32, i32) {
    %c0_i32 = arith.constant 0 : i32
    return %arg0, %arg1 : i32, i32
  }
  func.func @transform_3(%arg0: i32, %arg1: i32) -> (i32, i32) {
    %c0_i32 = arith.constant 0 : i32
    %c0_i32_0 = arith.constant 0 : i32
    return %arg0, %c0_i32 : i32, i32
  }
  func.func @transform_4(%arg0: i32, %arg1: i32) -> (i32, i32) {
    %c0_i32 = arith.constant 0 : i32
    %c0_i32_0 = arith.constant 0 : i32
    return %arg0, %c0_i32 : i32, i32
  }
  func.func @transform_5(%arg0: i32, %arg1: i32) -> (i32, i32) {
    %c0_i32 = arith.constant 0 : i32
    %c0_i32_0 = arith.constant 0 : i32
    return %arg0, %c0_i32 : i32, i32
  }
}

</mosaic_0001>

<bundles_post_ra>
// kernel: _forward.1
= control target key start
LH: loop header
LB: loop body
LE: loop exit
PB: predicated region body
PF: predicated region fallthrough
CT: control target
= control target key end

     0   :  { %11 = vsyncpa [#allocation8], 0  ;;  %s275_s0 = inlined_call_operand.hbm [shape: f32[8,256], index: 0, kind: input, shape index: {}]   ;;  %s276_s1 = inlined_call_operand.hbm [shape: f32[8,256], index: 1, kind: input, shape index: {}]   ;;  %s277_s2 = inlined_call_operand.hbm [shape: f32[8,256], index: 2, kind: input, shape index: {}]   ;;  %s278_s3 = inlined_call_operand.vmem [shape: f32[8,1], index: 3, kind: output, shape index: {0}]   ;;  %s279_s4 = inlined_call_operand.vmem [shape: f32[8,1], index: 4, kind: output, shape index: {1}]   ;;  %s280_s5 = inlined_call_operand.vmem [shape: f32[8,1], index: 5, kind: output, shape index: {2}]  }
   0x1   :  { %12 = vsyncpa [#allocation10], 0  ;;  %s224_s18 = smov [#allocation9]   ;;  %s225_s20 = smov [#allocation7]  }
   0x2   :  { %s29_s19 = sshll.u32 %s224_s18, 4  ;;  %s19_s21 = sshll.u32 %s225_s20, 4  ;;  %s30_s19 = int_to_ptr.vmem [resolvable:$true] %s29_s19  ;;  %s20_s21 = int_to_ptr.vmem [resolvable:$true] %s19_s21 }
   0x3   :  { %s168_s22 = scalar_lea.vmem %s30_s19, 256  ;;  %p173_p1 = scmp.lt.s32.totalorder %s30_s19, %s30_s19 }
   0x4   :  { %p169_p0 = scmp.ne.s32.totalorder %s30_s19, %s168_s22  ;;  %p174_p2 = scmp.lt.s32.totalorder %s168_s22, %s168_s22 }
   0x6   :  { %p175_p3 = por %p174_p2, %p173_p1 }
   0x8   :  { %p176_p4 = pnand %p175_p3, %p169_p0 }
   0xa   :  { %179 = shalt.err (!%p176_p4)
}
   0xb   :  { %32 = dma.hbm_to_vmem [thread:$0]  %s276_s1, 256, %s30_s19, [#allocation10]  }
   0xc   :  { %s188_s25 = scalar_lea.vmem %s20_s21, 256  ;;  %p193_p6 = scmp.lt.s32.totalorder %s20_s21, %s20_s21 }
   0xd   :  { %p189_p5 = scmp.ne.s32.totalorder %s20_s21, %s188_s25  ;;  %p194_p7 = scmp.lt.s32.totalorder %s188_s25, %s188_s25 }
   0xf   :  { %p195_p8 = por %p194_p7, %p193_p6 }
  0x11   :  { %p196_p9 = pnand %p195_p8, %p189_p5 }
  0x13   :  { %199 = shalt.err (!%p196_p9)
}
  0x14   :  { %22 = dma.hbm_to_vmem [thread:$0]  %s275_s0, 256, %s20_s21, [#allocation8]  }
  0x15   :  { %s226_s28 = smov [#allocation11]  }
  0x16   :  { %s39_s29 = sshll.u32 %s226_s28, 4  ;;  %s40_s29 = int_to_ptr.vmem [resolvable:$true] %s39_s29 }
  0x17   :  { %s208_s30 = scalar_lea.vmem %s40_s29, 256  ;;  %p213_p11 = scmp.lt.s32.totalorder %s40_s29, %s40_s29 }
  0x18   :  { %p209_p10 = scmp.ne.s32.totalorder %s40_s29, %s208_s30  ;;  %p214_p12 = scmp.lt.s32.totalorder %s208_s30, %s208_s30 }
  0x1a   :  { %p215_p13 = por %p214_p12, %p213_p11 }
  0x1c   :  { %p216_p0 = pnand %p215_p13, %p209_p10 }
  0x1e   :  { %219 = shalt.err (!%p216_p0)
}
  0x1f   :  { %42 = dma.hbm_to_vmem [thread:$0]  %s277_s2, 256, %s40_s29, [#allocation10]  }
  0x20   :  { %220 = dma.done.wait [#allocation8], 256  }
  0x21   :  { %221 = vsyncadd [#allocation8], 4294967040 }
  0x22   :  { %222 = dma.done.wait [#allocation10], 512  }
  0x23   :  { %223 = vsyncadd [#allocation10], 4294966784  ;;  %v52_v0 = vld [vmem:[#allocation7] sm:$0xff]  ;;  %v65_v2 = vld [vmem:[#allocation7 + $0x8] sm:$0xff]  ;;  %vm132_vm0 = vcmask 7168  }
  0x24   :  { %v54_v1 = vld [vmem:[#allocation11] sm:$0xff]  ;;  %v67_v4 = vld [vmem:[#allocation11 + $0x8] sm:$0xff]  ;;  %v53_v6 = vld [vmem:[#allocation9] sm:$0xff]  ;;  %v58_v18 = vmul.f32 %v52_v0, %v52_v0  ;;  %v71_v19 = vmul.f32 %v65_v2, %v65_v2 }
  0x25   :  { %v55_v3 = vmul.f32 %v54_v1, %v52_v0  ;;  %v59_v5 = vmul.f32 %v54_v1, %v54_v1  ;;  %v66_v7 = vld [vmem:[#allocation9 + $0x8] sm:$0xff]  ;;  %v68_v8 = vmul.f32 %v67_v4, %v65_v2  ;;  %v72_v9 = vmul.f32 %v67_v4, %v67_v4 }
  0x26   :  { %v76_v17 = vadd.f32 %v67_v4, %v54_v1  ;;  %v75_v20 = vadd.f32 %v71_v19, %v58_v18 }
  0x27   :  { %v56_v10 = vand.u32 2147483647, %v55_v3  ;;  %v57_v11 = vmul.f32 %v55_v3, %v53_v6  ;;  %v69_v12 = vand.u32 2147483647, %v68_v8  ;;  %v77_v13 = vadd.f32 %v72_v9, %v59_v5 }
  0x28   :  { %v70_v14 = vmul.f32 %v68_v8, %v66_v7 }
  0x29   :  { %v73_v15 = vadd.f32 %v69_v12, %v56_v10  ;;  %126 = vadd.xlane.f32.xlu1 %v77_v13 }
  0x2a   :  { %v74_v16 = vadd.f32 %v70_v14, %v57_v11 }
  0x2b   :  { %110 = vadd.xlane.f32.xlu0 %v73_v15 }
  0x2d   :  { %114 = vadd.xlane.f32.xlu1 %v74_v16 }
  0x2f   :  { %122 = vadd.xlane.f32.xlu0 %v76_v17 }
  0x33   :  { %118 = vadd.xlane.f32.xlu0 %v75_v20 }
  0xb2   :  { %v127_v25 = vpop.xlane.xlu1 %126 }
  0xb4   :  { %v111_v21 = vpop.xlane.xlu0 %110 }
  0xb5   :  { %v129_v22 = vadd.f32 1e-08, %v111_v21 }
  0xb6   :  { %v115_v30 = vpop.xlane.xlu1 %114 }
  0xb7   :  { %158 = vrcp.f32 %v129_v22 }
  0xb8   :  { %v123_v23 = vpop.xlane.xlu0 %122 }
  0xb9   :  { %v135_v24 = vmul.f32 %v123_v23, %v123_v23 }
  0xbb   :  { %v136_v26 = vmul.f32 0.00390625, %v135_v24 }
  0xbc   :  { %v119_v27 = vpop.xlane.xlu0 %118 }
  0xbd   :  { %v137_v28 = vsub.f32 %v127_v25, %v136_v26  ;;  %134 = vst.msk [vmem:[%s279_s4] sm:$0xff] %vm132_vm0, %v119_v27 }
  0xbf   :  { %v139_v29 = vmul.f32 0.003921569, %v137_v28 }
  0xc1   :  { %140 = vst.msk [vmem:[%s280_s5] sm:$0xff] %vm132_vm0, %v139_v29 }
  0xc4   :  { %v159_v31 = vpop.eup %158 }
  0xc5   :  { %v131_v32 = vmul.f32 %v159_v31, %v115_v30 }
  0xc7   :  { %133 = vst.msk [vmem:[%s278_s3] sm:$0xff] %vm132_vm0, %v131_v32 }
  0xc8   :  { %153 = vsyncpa [#allocation8], 1 }
  0xc9   :  { %154 = vsyncpa [#allocation10], 1 }

</bundles_post_ra>
